<compile_context>
chip_gen: v7x
topology: tpu7x:2x2x1
jax: 0.10.0
libtpu: 0.0.40
codegen_flags: <defaults>
</compile_context>

<pallas_src>
import functools
import math

import jax
import jax.numpy as jnp
from jax.experimental import pallas as pl
from jax.experimental.pallas import tpu as pltpu

# ----------------------------- configuration --------------------------------
HIDDEN = 32
INTERMEDIATE = 64
NUM_HEADS = 4
BATCH = 2
SEQ = 8
EPS = 1e-12
NEG_INF = -1e9  # cross-batch mask value (exp underflows to exactly 0 in f32)


# ------------------------------ Pallas kernel -------------------------------
def _layernorm(x, gamma, beta):
    # x: [R, H]; gamma/beta: [1, H]  (f32 math, matches the module's LayerNorm)
    u = jnp.mean(x, axis=-1, keepdims=True)
    s = jnp.mean(jnp.square(x - u), axis=-1, keepdims=True)
    return gamma * ((x - u) * jax.lax.rsqrt(s + EPS)) + beta


def encoder_kernel(
    x_ref,      # [B*S, H]        f32 hidden states (batch folded into rows)
    mask_ref,   # [B*S, B*S]      f32 combined additive attention mask
    wqkv_ref,   # [H, 3*H]        f32 fused QKV weight (Q part pre-scaled)
    bqkv_ref,   # [1, 3*H]        f32 fused QKV bias   (Q part pre-scaled)
    wao_ref,    # [H, H]          f32 attention-output dense weight
    wi_ref,     # [H, I]          f32 intermediate dense weight
    wo_ref,     # [I, H]          f32 output dense weight
    vec_ref,    # [7, max(H, I)]  f32 {bao, g1, be1, bi, bo, g2, be2}
    out_ref,    # [B*S, H]        f32
    *, num_heads, hidden, intermediate,
):
    H, I, nH = hidden, intermediate, num_heads
    dh = H // nH

    x = x_ref[...]                                    # [BS, H]
    mask = mask_ref[...]                              # [BS, BS]

    # --- fused QKV projection (single lane-dense matmul) ---------------------
    qkv = jnp.dot(x, wqkv_ref[...],
                  preferred_element_type=jnp.float32) + bqkv_ref[...]  # [BS, 3H]

    # --- per-head attention via static lane slices ---------------------------
    ctx_parts = []
    for h in range(nH):
        q_h = qkv[:, h * dh:(h + 1) * dh]                      # [BS, dh]
        k_h = qkv[:, H + h * dh:H + (h + 1) * dh]              # [BS, dh]
        v_h = qkv[:, 2 * H + h * dh:2 * H + (h + 1) * dh]      # [BS, dh]

        s_h = jnp.dot(q_h, k_h.T,
                      preferred_element_type=jnp.float32) + mask   # [BS, BS]
        s_h = s_h - jnp.max(s_h, axis=-1, keepdims=True)
        p_h = jnp.exp(s_h)
        p_h = p_h / jnp.sum(p_h, axis=-1, keepdims=True)
        # dropout(attention_probs) is identity in eval mode
        ctx_parts.append(jnp.dot(p_h, v_h,
                                 preferred_element_type=jnp.float32))  # [BS, dh]
    ctx = jnp.concatenate(ctx_parts, axis=-1)                  # [BS, H]

    # --- SelfOutput: dense + residual + LayerNorm -----------------------------
    attn = jnp.dot(ctx, wao_ref[...],
                   preferred_element_type=jnp.float32) + vec_ref[0:1, :H]
    h1 = _layernorm(attn + x, vec_ref[1:2, :H], vec_ref[2:3, :H])

    # --- Intermediate: dense + ReLU -------------------------------------------
    inter = jnp.dot(h1, wi_ref[...],
                    preferred_element_type=jnp.float32) + vec_ref[3:4, :I]
    inter = jnp.maximum(inter, 0.0)

    # --- Output: dense + residual + LayerNorm ----------------------------------
    out = jnp.dot(inter, wo_ref[...],
                  preferred_element_type=jnp.float32) + vec_ref[4:5, :H]
    out_ref[...] = _layernorm(out + h1, vec_ref[5:6, :H], vec_ref[6:7, :H])


# ------------------------------- wrapper -------------------------------------
def _combined_mask(mask_bias):
    """[B,1,S] additive key bias -> [B*S, B*S] mask with -1e9 across batches."""
    B, _, S = mask_bias.shape
    batch_id = jnp.repeat(jnp.arange(B), S)                    # [BS]
    same = batch_id[:, None] == batch_id[None, :]              # [BS, BS]
    key_bias = mask_bias[:, 0, :].reshape(B * S)               # [BS]
    return jnp.where(same, key_bias[None, :], jnp.float32(NEG_INF))


@functools.partial(jax.jit, static_argnames=("num_heads",))
def encoder_forward(x, mask_bias, params, *, num_heads):
    """Encoder.forward. x: [B,S,H] f32; mask_bias: [B,1,S] f32 additive bias."""
    B, S, H = x.shape
    I = params["wi"].shape[1]

    x2d = x.reshape(B * S, H)
    mask2d = _combined_mask(mask_bias)

    vmem = pl.BlockSpec(memory_space=pltpu.MemorySpace.VMEM)
    out2d = pl.pallas_call(
        functools.partial(encoder_kernel, num_heads=num_heads,
                          hidden=H, intermediate=I),
        out_shape=jax.ShapeDtypeStruct((B * S, H), jnp.float32),
        in_specs=[vmem] * 8,
        out_specs=vmem,
    )(x2d, mask2d, params["w_qkv"], params["b_qkv"], params["wao"],
      params["wi"], params["wo"], params["vecs"])
    return out2d.reshape(B, S, H)


# --------------------------- parameter handling -------------------------------
def init_raw_params(key, hidden, intermediate):
    """PyTorch-style nn.Linear init; weights stored as [in, out]."""
    keys = jax.random.split(key, 6)

    def lin(k, fan_in, fan_out):
        kw, kb = jax.random.split(k)
        s = 1.0 / math.sqrt(fan_in)
        w = jax.random.uniform(kw, (fan_in, fan_out), jnp.float32, -s, s)
        b = jax.random.uniform(kb, (fan_out,), jnp.float32, -s, s)
        return w, b

    wq, bq = lin(keys[0], hidden, hidden)
    wk, bk = lin(keys[1], hidden, hidden)
    wv, bv = lin(keys[2], hidden, hidden)
    wao, bao = lin(keys[3], hidden, hidden)
    wi, bi = lin(keys[4], hidden, intermediate)
    wo, bo = lin(keys[5], intermediate, hidden)
    return dict(
        wq=wq, bq=bq, wk=wk, bk=bk, wv=wv, bv=bv, wao=wao, bao=bao,
        g1=jnp.ones((hidden,), jnp.float32), be1=jnp.zeros((hidden,), jnp.float32),
        wi=wi, bi=bi, wo=wo, bo=bo,
        g2=jnp.ones((hidden,), jnp.float32), be2=jnp.zeros((hidden,), jnp.float32),
    )


def pack_params(p, hidden, intermediate, num_heads):
    """Fuse QKV into one [H, 3H] weight (1/sqrt(dh) folded into Q) and pack all
    small bias / LayerNorm vectors into one table.  Everything stays float32."""
    H, I = hidden, intermediate
    dh = H // num_heads
    scale = 1.0 / math.sqrt(dh)

    w_qkv = jnp.concatenate([p["wq"] * scale, p["wk"], p["wv"]], axis=1)   # [H, 3H]
    b_qkv = jnp.concatenate([p["bq"] * scale, p["bk"], p["bv"]])[None, :]  # [1, 3H]

    W = max(H, I)

    def pad(v):
        return jnp.pad(v, (0, W - v.shape[0]))

    vecs = jnp.stack([pad(p["bao"]), pad(p["g1"]), pad(p["be1"]),
                      pad(p["bi"]), pad(p["bo"]), pad(p["g2"]), pad(p["be2"])])

    return dict(w_qkv=w_qkv.astype(jnp.float32), b_qkv=b_qkv.astype(jnp.float32),
                wao=p["wao"].astype(jnp.float32),
                wi=p["wi"].astype(jnp.float32), wo=p["wo"].astype(jnp.float32),
                vecs=vecs.astype(jnp.float32))


# ------------------------ pure-JAX reference (for check) ----------------------
def encoder_reference(x, mask_bias, p, num_heads):
    B, S, H = x.shape
    dh = H // num_heads

    def split_heads(t):
        return t.reshape(B, S, num_heads, dh).transpose(0, 2, 1, 3)

    q = split_heads(x @ p["wq"] + p["bq"])
    k = split_heads(x @ p["wk"] + p["bk"])
    v = split_heads(x @ p["wv"] + p["bv"])
    scores = jnp.einsum("bhqd,bhkd->bhqk", q, k) / math.sqrt(dh)
    scores = scores + mask_bias[:, :, None, :]          # [B,1,1,S]
    probs = jax.nn.softmax(scores, axis=-1)
    ctx = jnp.einsum("bhqk,bhkd->bhqd", probs, v)
    ctx = ctx.transpose(0, 2, 1, 3).reshape(B, S, H)

    def ln(t, g, b):
        u = t.mean(-1, keepdims=True)
        s = ((t - u) ** 2).mean(-1, keepdims=True)
        return g * (t - u) / jnp.sqrt(s + EPS) + b

    attn = ln(ctx @ p["wao"] + p["bao"] + x, p["g1"], p["be1"])
    inter = jax.nn.relu(attn @ p["wi"] + p["bi"])
    return ln(inter @ p["wo"] + p["bo"] + attn, p["g2"], p["be2"])


# ---------------------------------- main -------------------------------------
if __name__ == "__main__":
    key = jax.random.PRNGKey(0)
    k_x, k_m, k_p = jax.random.split(key, 3)

    # Inputs
    x = jax.random.normal(k_x, (BATCH, SEQ, HIDDEN), jnp.float32)
    # Binary padding mask -> additive bias (1 - mask) * -10000, shape [B, 1, S]
    keep = (jax.random.uniform(k_m, (BATCH, 1, SEQ)) > 0.2).astype(jnp.float32)
    mask_bias = (1.0 - keep) * -10000.0

    raw = init_raw_params(k_p, HIDDEN, INTERMEDIATE)
    params = pack_params(raw, HIDDEN, INTERMEDIATE, NUM_HEADS)

    out = encoder_forward(x, mask_bias, params, num_heads=NUM_HEADS)
    out = jax.block_until_ready(out)
    assert out.shape == (BATCH, SEQ, HIDDEN)

    ref = encoder_reference(x, mask_bias, raw, NUM_HEADS)
    assert jnp.allclose(out, ref, rtol=5e-3, atol=5e-3), \
        float(jnp.max(jnp.abs(out - ref)))
    print("KERNEL_OK")
</pallas_src>

<mosaic_0001>
module attributes {stable_mosaic.version = 11 : i64} {
  func.func @encoder_kernel(%arg0: memref<16x32xf32, #tpu.memory_space<vmem>>, %arg1: memref<16x16xf32, #tpu.memory_space<vmem>>, %arg2: memref<32x96xf32, #tpu.memory_space<vmem>>, %arg3: memref<1x96xf32, #tpu.memory_space<vmem>>, %arg4: memref<32x32xf32, #tpu.memory_space<vmem>>, %arg5: memref<32x64xf32, #tpu.memory_space<vmem>>, %arg6: memref<64x32xf32, #tpu.memory_space<vmem>>, %arg7: memref<7x64xf32, #tpu.memory_space<vmem>>, %arg8: memref<16x32xf32, #tpu.memory_space<vmem>>) attributes {dimension_semantics = [], scalar_prefetch = 0 : i64, scratch_operands = 0 : i64, tpu.core_type = #tpu.core_type<tc>} {
    %c0 = arith.constant 0 : index
    %c0_0 = arith.constant 0 : index
    %0 = vector.load %arg0[%c0, %c0_0] : memref<16x32xf32, #tpu.memory_space<vmem>>, vector<16x32xf32>
    %c0_1 = arith.constant 0 : index
    %c0_2 = arith.constant 0 : index
    %1 = vector.load %arg1[%c0_1, %c0_2] : memref<16x16xf32, #tpu.memory_space<vmem>>, vector<16x16xf32>
    %c0_3 = arith.constant 0 : index
    %c0_4 = arith.constant 0 : index
    %2 = vector.load %arg2[%c0_3, %c0_4] : memref<32x96xf32, #tpu.memory_space<vmem>>, vector<32x96xf32>
    %cst = arith.constant dense<0.000000e+00> : vector<16x96xf32>
    %3 = tpu.matmul %0, %2, %cst {dimension_numbers = #tpu.dot_dimension_numbers<[1], [0], [0], [1], [0, 0, 1, 1], [], []>} : vector<16x32xf32>, vector<32x96xf32>, vector<16x96xf32> -> vector<16x96xf32>
    %c0_5 = arith.constant 0 : index
    %c0_6 = arith.constant 0 : index
    %4 = vector.load %arg3[%c0_5, %c0_6] : memref<1x96xf32, #tpu.memory_space<vmem>>, vector<1x96xf32>
    %5 = vector.broadcast %4 : vector<1x96xf32> to vector<16x96xf32>
    %6 = arith.addf %3, %5 : vector<16x96xf32>
    %7 = vector.extract_strided_slice %6 {offsets = [0, 0], sizes = [16, 8], strides = [1, 1]} : vector<16x96xf32> to vector<16x8xf32>
    %8 = vector.extract_strided_slice %6 {offsets = [0, 32], sizes = [16, 8], strides = [1, 1]} : vector<16x96xf32> to vector<16x8xf32>
    %9 = vector.extract_strided_slice %6 {offsets = [0, 64], sizes = [16, 8], strides = [1, 1]} : vector<16x96xf32> to vector<16x8xf32>
    %10 = tpu.transpose %8, [1, 0] : vector<16x8xf32> -> vector<8x16xf32>
    %cst_7 = arith.constant dense<0.000000e+00> : vector<16x16xf32>
    %11 = tpu.matmul %7, %10, %cst_7 {dimension_numbers = #tpu.dot_dimension_numbers<[1], [0], [0], [1], [0, 0, 1, 1], [], []>} : vector<16x8xf32>, vector<8x16xf32>, vector<16x16xf32> -> vector<16x16xf32>
    %12 = arith.addf %11, %1 : vector<16x16xf32>
    %cst_8 = arith.constant dense<0xFF800000> : vector<16xf32>
    %13 = vector.multi_reduction <maximumf>, %12, %cst_8 [1] : vector<16x16xf32> to vector<16xf32>
    %14 = vector.shape_cast %13 : vector<16xf32> to vector<16x1xf32>
    %15 = vector.broadcast %14 : vector<16x1xf32> to vector<16x16xf32>
    %16 = arith.subf %12, %15 : vector<16x16xf32>
    %17 = math.exp %16 : vector<16x16xf32>
    %cst_9 = arith.constant dense<0.000000e+00> : vector<16xf32>
    %18 = vector.multi_reduction <add>, %17, %cst_9 [1] : vector<16x16xf32> to vector<16xf32>
    %19 = vector.shape_cast %18 : vector<16xf32> to vector<16x1xf32>
    %20 = vector.broadcast %19 : vector<16x1xf32> to vector<16x16xf32>
    %21 = arith.divf %17, %20 : vector<16x16xf32>
    %cst_10 = arith.constant dense<0.000000e+00> : vector<16x8xf32>
    %22 = tpu.matmul %21, %9, %cst_10 {dimension_numbers = #tpu.dot_dimension_numbers<[1], [0], [0], [1], [0, 0, 1, 1], [], []>} : vector<16x16xf32>, vector<16x8xf32>, vector<16x8xf32> -> vector<16x8xf32>
    %23 = vector.extract_strided_slice %6 {offsets = [0, 8], sizes = [16, 8], strides = [1, 1]} : vector<16x96xf32> to vector<16x8xf32>
    %24 = vector.extract_strided_slice %6 {offsets = [0, 40], sizes = [16, 8], strides = [1, 1]} : vector<16x96xf32> to vector<16x8xf32>
    %25 = vector.extract_strided_slice %6 {offsets = [0, 72], sizes = [16, 8], strides = [1, 1]} : vector<16x96xf32> to vector<16x8xf32>
    %26 = tpu.transpose %24, [1, 0] : vector<16x8xf32> -> vector<8x16xf32>
    %cst_11 = arith.constant dense<0.000000e+00> : vector<16x16xf32>
    %27 = tpu.matmul %23, %26, %cst_11 {dimension_numbers = #tpu.dot_dimension_numbers<[1], [0], [0], [1], [0, 0, 1, 1], [], []>} : vector<16x8xf32>, vector<8x16xf32>, vector<16x16xf32> -> vector<16x16xf32>
    %28 = arith.addf %27, %1 : vector<16x16xf32>
    %cst_12 = arith.constant dense<0xFF800000> : vector<16xf32>
    %29 = vector.multi_reduction <maximumf>, %28, %cst_12 [1] : vector<16x16xf32> to vector<16xf32>
    %30 = vector.shape_cast %29 : vector<16xf32> to vector<16x1xf32>
    %31 = vector.broadcast %30 : vector<16x1xf32> to vector<16x16xf32>
    %32 = arith.subf %28, %31 : vector<16x16xf32>
    %33 = math.exp %32 : vector<16x16xf32>
    %cst_13 = arith.constant dense<0.000000e+00> : vector<16xf32>
    %34 = vector.multi_reduction <add>, %33, %cst_13 [1] : vector<16x16xf32> to vector<16xf32>
    %35 = vector.shape_cast %34 : vector<16xf32> to vector<16x1xf32>
    %36 = vector.broadcast %35 : vector<16x1xf32> to vector<16x16xf32>
    %37 = arith.divf %33, %36 : vector<16x16xf32>
    %cst_14 = arith.constant dense<0.000000e+00> : vector<16x8xf32>
    %38 = tpu.matmul %37, %25, %cst_14 {dimension_numbers = #tpu.dot_dimension_numbers<[1], [0], [0], [1], [0, 0, 1, 1], [], []>} : vector<16x16xf32>, vector<16x8xf32>, vector<16x8xf32> -> vector<16x8xf32>
    %39 = vector.extract_strided_slice %6 {offsets = [0, 16], sizes = [16, 8], strides = [1, 1]} : vector<16x96xf32> to vector<16x8xf32>
    %40 = vector.extract_strided_slice %6 {offsets = [0, 48], sizes = [16, 8], strides = [1, 1]} : vector<16x96xf32> to vector<16x8xf32>
    %41 = vector.extract_strided_slice %6 {offsets = [0, 80], sizes = [16, 8], strides = [1, 1]} : vector<16x96xf32> to vector<16x8xf32>
    %42 = tpu.transpose %40, [1, 0] : vector<16x8xf32> -> vector<8x16xf32>
    %cst_15 = arith.constant dense<0.000000e+00> : vector<16x16xf32>
    %43 = tpu.matmul %39, %42, %cst_15 {dimension_numbers = #tpu.dot_dimension_numbers<[1], [0], [0], [1], [0, 0, 1, 1], [], []>} : vector<16x8xf32>, vector<8x16xf32>, vector<16x16xf32> -> vector<16x16xf32>
    %44 = arith.addf %43, %1 : vector<16x16xf32>
    %cst_16 = arith.constant dense<0xFF800000> : vector<16xf32>
    %45 = vector.multi_reduction <maximumf>, %44, %cst_16 [1] : vector<16x16xf32> to vector<16xf32>
    %46 = vector.shape_cast %45 : vector<16xf32> to vector<16x1xf32>
    %47 = vector.broadcast %46 : vector<16x1xf32> to vector<16x16xf32>
    %48 = arith.subf %44, %47 : vector<16x16xf32>
    %49 = math.exp %48 : vector<16x16xf32>
    %cst_17 = arith.constant dense<0.000000e+00> : vector<16xf32>
    %50 = vector.multi_reduction <add>, %49, %cst_17 [1] : vector<16x16xf32> to vector<16xf32>
    %51 = vector.shape_cast %50 : vector<16xf32> to vector<16x1xf32>
    %52 = vector.broadcast %51 : vector<16x1xf32> to vector<16x16xf32>
    %53 = arith.divf %49, %52 : vector<16x16xf32>
    %cst_18 = arith.constant dense<0.000000e+00> : vector<16x8xf32>
    %54 = tpu.matmul %53, %41, %cst_18 {dimension_numbers = #tpu.dot_dimension_numbers<[1], [0], [0], [1], [0, 0, 1, 1], [], []>} : vector<16x16xf32>, vector<16x8xf32>, vector<16x8xf32> -> vector<16x8xf32>
    %55 = vector.extract_strided_slice %6 {offsets = [0, 24], sizes = [16, 8], strides = [1, 1]} : vector<16x96xf32> to vector<16x8xf32>
    %56 = vector.extract_strided_slice %6 {offsets = [0, 56], sizes = [16, 8], strides = [1, 1]} : vector<16x96xf32> to vector<16x8xf32>
    %57 = vector.extract_strided_slice %6 {offsets = [0, 88], sizes = [16, 8], strides = [1, 1]} : vector<16x96xf32> to vector<16x8xf32>
    %58 = tpu.transpose %56, [1, 0] : vector<16x8xf32> -> vector<8x16xf32>
    %cst_19 = arith.constant dense<0.000000e+00> : vector<16x16xf32>
    %59 = tpu.matmul %55, %58, %cst_19 {dimension_numbers = #tpu.dot_dimension_numbers<[1], [0], [0], [1], [0, 0, 1, 1], [], []>} : vector<16x8xf32>, vector<8x16xf32>, vector<16x16xf32> -> vector<16x16xf32>
    %60 = arith.addf %59, %1 : vector<16x16xf32>
    %cst_20 = arith.constant dense<0xFF800000> : vector<16xf32>
    %61 = vector.multi_reduction <maximumf>, %60, %cst_20 [1] : vector<16x16xf32> to vector<16xf32>
    %62 = vector.shape_cast %61 : vector<16xf32> to vector<16x1xf32>
    %63 = vector.broadcast %62 : vector<16x1xf32> to vector<16x16xf32>
    %64 = arith.subf %60, %63 : vector<16x16xf32>
    %65 = math.exp %64 : vector<16x16xf32>
    %cst_21 = arith.constant dense<0.000000e+00> : vector<16xf32>
    %66 = vector.multi_reduction <add>, %65, %cst_21 [1] : vector<16x16xf32> to vector<16xf32>
    %67 = vector.shape_cast %66 : vector<16xf32> to vector<16x1xf32>
    %68 = vector.broadcast %67 : vector<16x1xf32> to vector<16x16xf32>
    %69 = arith.divf %65, %68 : vector<16x16xf32>
    %cst_22 = arith.constant dense<0.000000e+00> : vector<16x8xf32>
    %70 = tpu.matmul %69, %57, %cst_22 {dimension_numbers = #tpu.dot_dimension_numbers<[1], [0], [0], [1], [0, 0, 1, 1], [], []>} : vector<16x16xf32>, vector<16x8xf32>, vector<16x8xf32> -> vector<16x8xf32>
    %71 = tpu.concatenate %22, %38, %54, %70 in 1 : vector<16x8xf32>, vector<16x8xf32>, vector<16x8xf32>, vector<16x8xf32> -> vector<16x32xf32>
    %c0_23 = arith.constant 0 : index
    %c0_24 = arith.constant 0 : index
    %72 = vector.load %arg4[%c0_23, %c0_24] : memref<32x32xf32, #tpu.memory_space<vmem>>, vector<32x32xf32>
    %cst_25 = arith.constant dense<0.000000e+00> : vector<16x32xf32>
    %73 = tpu.matmul %71, %72, %cst_25 {dimension_numbers = #tpu.dot_dimension_numbers<[1], [0], [0], [1], [0, 0, 1, 1], [], []>} : vector<16x32xf32>, vector<32x32xf32>, vector<16x32xf32> -> vector<16x32xf32>
    %c0_26 = arith.constant 0 : index
    %c0_27 = arith.constant 0 : index
    %74 = vector.load %arg7[%c0_26, %c0_27] : memref<7x64xf32, #tpu.memory_space<vmem>>, vector<1x32xf32>
    %75 = vector.broadcast %74 : vector<1x32xf32> to vector<16x32xf32>
    %76 = arith.addf %73, %75 : vector<16x32xf32>
    %77 = arith.addf %76, %0 : vector<16x32xf32>
    %c1 = arith.constant 1 : index
    %c0_28 = arith.constant 0 : index
    %78 = vector.load %arg7[%c1, %c0_28] : memref<7x64xf32, #tpu.memory_space<vmem>>, vector<1x32xf32>
    %c2 = arith.constant 2 : index
    %c0_29 = arith.constant 0 : index
    %79 = vector.load %arg7[%c2, %c0_29] : memref<7x64xf32, #tpu.memory_space<vmem>>, vector<1x32xf32>
    %cst_30 = arith.constant dense<0.000000e+00> : vector<16xf32>
    %80 = vector.multi_reduction <add>, %77, %cst_30 [1] : vector<16x32xf32> to vector<16xf32>
    %81 = vector.shape_cast %80 : vector<16xf32> to vector<16x1xf32>
    %cst_31 = arith.constant 3.200000e+01 : f32
    %82 = vector.broadcast %cst_31 : f32 to vector<16x1xf32>
    %83 = arith.divf %81, %82 : vector<16x1xf32>
    %84 = vector.broadcast %83 : vector<16x1xf32> to vector<16x32xf32>
    %85 = arith.subf %77, %84 : vector<16x32xf32>
    %86 = arith.mulf %85, %85 : vector<16x32xf32>
    %cst_32 = arith.constant dense<0.000000e+00> : vector<16xf32>
    %87 = vector.multi_reduction <add>, %86, %cst_32 [1] : vector<16x32xf32> to vector<16xf32>
    %88 = vector.shape_cast %87 : vector<16xf32> to vector<16x1xf32>
    %cst_33 = arith.constant 3.200000e+01 : f32
    %89 = vector.broadcast %cst_33 : f32 to vector<16x1xf32>
    %90 = arith.divf %88, %89 : vector<16x1xf32>
    %91 = vector.broadcast %83 : vector<16x1xf32> to vector<16x32xf32>
    %92 = arith.subf %77, %91 : vector<16x32xf32>
    %cst_34 = arith.constant 9.99999996E-13 : f32
    %93 = vector.broadcast %cst_34 : f32 to vector<16x1xf32>
    %94 = arith.addf %90, %93 : vector<16x1xf32>
    %95 = math.rsqrt %94 : vector<16x1xf32>
    %96 = vector.broadcast %95 : vector<16x1xf32> to vector<16x32xf32>
    %97 = arith.mulf %92, %96 : vector<16x32xf32>
    %98 = vector.broadcast %78 : vector<1x32xf32> to vector<16x32xf32>
    %99 = arith.mulf %98, %97 : vector<16x32xf32>
    %100 = vector.broadcast %79 : vector<1x32xf32> to vector<16x32xf32>
    %101 = arith.addf %99, %100 : vector<16x32xf32>
    %c0_35 = arith.constant 0 : index
    %c0_36 = arith.constant 0 : index
    %102 = vector.load %arg5[%c0_35, %c0_36] : memref<32x64xf32, #tpu.memory_space<vmem>>, vector<32x64xf32>
    %cst_37 = arith.constant dense<0.000000e+00> : vector<16x64xf32>
    %103 = tpu.matmul %101, %102, %cst_37 {dimension_numbers = #tpu.dot_dimension_numbers<[1], [0], [0], [1], [0, 0, 1, 1], [], []>} : vector<16x32xf32>, vector<32x64xf32>, vector<16x64xf32> -> vector<16x64xf32>
    %c3 = arith.constant 3 : index
    %c0_38 = arith.constant 0 : index
    %104 = vector.load %arg7[%c3, %c0_38] : memref<7x64xf32, #tpu.memory_space<vmem>>, vector<1x64xf32>
    %105 = vector.broadcast %104 : vector<1x64xf32> to vector<16x64xf32>
    %106 = arith.addf %103, %105 : vector<16x64xf32>
    %cst_39 = arith.constant 0.000000e+00 : f32
    %107 = vector.broadcast %cst_39 : f32 to vector<16x64xf32>
    %108 = arith.maximumf %106, %107 : vector<16x64xf32>
    %c0_40 = arith.constant 0 : index
    %c0_41 = arith.constant 0 : index
    %109 = vector.load %arg6[%c0_40, %c0_41] : memref<64x32xf32, #tpu.memory_space<vmem>>, vector<64x32xf32>
    %cst_42 = arith.constant dense<0.000000e+00> : vector<16x32xf32>
    %110 = tpu.matmul %108, %109, %cst_42 {dimension_numbers = #tpu.dot_dimension_numbers<[1], [0], [0], [1], [0, 0, 1, 1], [], []>} : vector<16x64xf32>, vector<64x32xf32>, vector<16x32xf32> -> vector<16x32xf32>
    %c4 = arith.constant 4 : index
    %c0_43 = arith.constant 0 : index
    %111 = vector.load %arg7[%c4, %c0_43] : memref<7x64xf32, #tpu.memory_space<vmem>>, vector<1x32xf32>
    %112 = vector.broadcast %111 : vector<1x32xf32> to vector<16x32xf32>
    %113 = arith.addf %110, %112 : vector<16x32xf32>
    %114 = arith.addf %113, %101 : vector<16x32xf32>
    %c5 = arith.constant 5 : index
    %c0_44 = arith.constant 0 : index
    %115 = vector.load %arg7[%c5, %c0_44] : memref<7x64xf32, #tpu.memory_space<vmem>>, vector<1x32xf32>
    %c6 = arith.constant 6 : index
    %c0_45 = arith.constant 0 : index
    %116 = vector.load %arg7[%c6, %c0_45] : memref<7x64xf32, #tpu.memory_space<vmem>>, vector<1x32xf32>
    %cst_46 = arith.constant dense<0.000000e+00> : vector<16xf32>
    %117 = vector.multi_reduction <add>, %114, %cst_46 [1] : vector<16x32xf32> to vector<16xf32>
    %118 = vector.shape_cast %117 : vector<16xf32> to vector<16x1xf32>
    %cst_47 = arith.constant 3.200000e+01 : f32
    %119 = vector.broadcast %cst_47 : f32 to vector<16x1xf32>
    %120 = arith.divf %118, %119 : vector<16x1xf32>
    %121 = vector.broadcast %120 : vector<16x1xf32> to vector<16x32xf32>
    %122 = arith.subf %114, %121 : vector<16x32xf32>
    %123 = arith.mulf %122, %122 : vector<16x32xf32>
    %cst_48 = arith.constant dense<0.000000e+00> : vector<16xf32>
    %124 = vector.multi_reduction <add>, %123, %cst_48 [1] : vector<16x32xf32> to vector<16xf32>
    %125 = vector.shape_cast %124 : vector<16xf32> to vector<16x1xf32>
    %cst_49 = arith.constant 3.200000e+01 : f32
    %126 = vector.broadcast %cst_49 : f32 to vector<16x1xf32>
    %127 = arith.divf %125, %126 : vector<16x1xf32>
    %128 = vector.broadcast %120 : vector<16x1xf32> to vector<16x32xf32>
    %129 = arith.subf %114, %128 : vector<16x32xf32>
    %cst_50 = arith.constant 9.99999996E-13 : f32
    %130 = vector.broadcast %cst_50 : f32 to vector<16x1xf32>
    %131 = arith.addf %127, %130 : vector<16x1xf32>
    %132 = math.rsqrt %131 : vector<16x1xf32>
    %133 = vector.broadcast %132 : vector<16x1xf32> to vector<16x32xf32>
    %134 = arith.mulf %129, %133 : vector<16x32xf32>
    %135 = vector.broadcast %115 : vector<1x32xf32> to vector<16x32xf32>
    %136 = arith.mulf %135, %134 : vector<16x32xf32>
    %137 = vector.broadcast %116 : vector<1x32xf32> to vector<16x32xf32>
    %138 = arith.addf %136, %137 : vector<16x32xf32>
    %c0_51 = arith.constant 0 : index
    %c0_52 = arith.constant 0 : index
    %139 = vector.load %arg8[%c0_51, %c0_52] : memref<16x32xf32, #tpu.memory_space<vmem>>, vector<16x32xf32>
    tpu.vector_store %arg8[%c0_51, %c0_52], %138 {strides = array<i32>} : memref<16x32xf32, #tpu.memory_space<vmem>>, vector<16x32xf32>,
    return
  }
}

</mosaic_0001>

<bundles_post_ra>
// kernel: eq.8
= control target key start
LH: loop header
LB: loop body
LE: loop exit
PB: predicated region body
PF: predicated region fallthrough
CT: control target
= control target key end

     0   :  { %vm7_vm0 = vcmask 64512   ;;  %vm13_vm1 = vcmask 130112   ;;  %s39_s0 = inlined_call_operand.vmem [shape: s32[2,8], index: 0, kind: input, shape index: {}]   ;;  %s40_s1 = inlined_call_operand.vmem [shape: s32[16], index: 1, kind: output, shape index: {}]  }
   0x1   :  { %v4_v0 = vld [vmem:[%s39_s0] sm:$0x3]  ;;  %s22_s0 = smov 8  }
   0x2   :  { %5 = vst [vmem:[#allocation1] sm:$0x3] %v4_v0 }
   0x9   :  { %v10_v1 = vld [vmem:[#allocation1 + $0x1] sm:$0x1]   ;;  %v6_v2 = vld [vmem:[#allocation1] sm:$0x1]  }
   0xa   :  { %11 = vrot.lane.b32.xlu0 %v10_v1, %s22_s0  ;;  %8 = vst.msk [vmem:[#allocation0] sm:$0x1] %vm7_vm0, %v6_v2  }
  0x7c   :  { %v12_v3 = vpop.permute.xlu0 %11  }
  0x7d   :  { %14 = vst.msk [vmem:[#allocation0] sm:$0x1] %vm13_vm1, %v12_v3  }
  0x84   :  { %v18_v4 = vld [vmem:[#allocation0] sm:$0x1] }
  0x85   :  { %20 = vst [vmem:[%s40_s1] sm:$0x1] %v18_v4 }

// kernel: encoder_forward.1
= control target key start
LH: loop header
LB: loop body
LE: loop exit
PB: predicated region body
PF: predicated region fallthrough
CT: control target
= control target key end

     0   :  { %vm45_vm0 = vcmask 261120   ;;  %s2048_s0 = inlined_call_operand.vmem [shape: f32[16,32], index: 0, kind: input, shape index: {}]   ;;  %s2049_s1 = inlined_call_operand.vmem [shape: f32[16,16], index: 1, kind: input, shape index: {}]   ;;  %s2050_s2 = inlined_call_operand.vmem [shape: f32[32,96], index: 2, kind: input, shape index: {}]   ;;  %s2051_s3 = inlined_call_operand.vmem [shape: f32[1,96], index: 3, kind: input, shape index: {}]   ;;  %s2052_s4 = inlined_call_operand.vmem [shape: f32[32,32], index: 4, kind: input, shape index: {}]   ;;  %s2053_s5 = inlined_call_operand.vmem [shape: f32[32,64], index: 5, kind: input, shape index: {}]   ;;  %s2054_s6 = inlined_call_operand.vmem [shape: f32[64,32], index: 6, kind: input, shape index: {}]   ;;  %s2055_s7 = inlined_call_operand.vmem [shape: f32[7,64], index: 7, kind: input, shape index: {}]   ;;  %s2056_s8 = inlined_call_operand.hbm [shape: f32[16,32], index: 8, kind: output, shape index: {}]  }
   0x1   :  { %v34_v0 = vld [vmem:[%s2050_s2] sm:$0xff]  ;;  %v35_v1 = vld [vmem:[%s2050_s2 + $0x8] sm:$0xff]  ;;  %v36_v2 = vld [vmem:[%s2050_s2 + $0x10] sm:$0xff] }
   0x2   :  { %v1546_v3 = vpack.c.bf16 %v35_v1, %v34_v0  ;;  %v37_v4 = vld [vmem:[%s2050_s2 + $0x18] sm:$0xff]  ;;  %v1822_v5 = vld [vmem:[%s2048_s0] sm:$0xff] }
   0x3   :  { %v1550_v6 = vpack.c.bf16 %v37_v4, %v36_v2  ;;  %1446 = vmatprep.mubr.msk.f32.mxu1 %vm45_vm0, %v1822_v5 }
   0x4   :  { %13 = vsyncpa [#allocation3], 0  ;;  %1547 = vmatprep.subr.bf16.mxu1 %v1546_v3  ;;  %v1829_v7 = vld [vmem:[%s2048_s0 + $0x8] sm:$0xff]  ;;  %v1338_v8 = vld [vmem:[%s2051_s3] ss:$0 sm:$0xff]  ;;  %vm133_vm1 = vcmask 64512  }
   0x5   :  { %1549 = vmatpush3.bf16.msra.mxu1 %v1546_v3  ;;  %s1746_s18 = smov 120   ;;  %s1747_s0 = smov 96   ;;  %vm1852_vm2 = vmpackc.low %vm133_vm1, %vm133_vm1  ;;  %v1871_v25 = vld [vmem:[%s2049_s1 + $0x8] sm:$0xff]  ;;  %v1876_v26 = vld [vmem:[%s2049_s1] sm:$0xff]  ;;  %vm217_vm3 = vcmask 130048   ;;  %vm955_vm4 = vcmask 195584  }
   0x6   :  { %1551 = vmatprep.subr.bf16.mxu1 %v1550_v6  ;;  %s1748_s3 = smov 88   ;;  %s1749_s1 = smov 64   ;;  %vm1196_vm5 = vcmask 523264  }
   0x7   :  { %s1750_s23 = smov 80   ;;  %s1751_s24 = smov 56  }
   0x8   :  { %s1752_s25 = smov 112   ;;  %s1753_s26 = smov 72  }
   0x9   :  { %1553 = vmatpush3.bf16.msra.mxu1 %v1550_v6  ;;  %s1754_s27 = smov 104   ;;  %s1755_s28 = smov 48  }
   0xa   :  { %s1756_s29 = smov 8   ;;  %s1757_s30 = smov 40  }
   0xb   :  { %s1758_s9 = smov 16   ;;  %s1759_s17 = smov 24  }
   0xc   :  { %1447 = vmatmul.mubr.msk.f32.vlgmr.msra.gmra.mrb[0].mxu1 %vm45_vm0, %v1829_v7 }
  0xdf   :  { %v1448_v9 = vpop.f32.mrb[0].mxu1 }
  0xe0   :  { %v1836_v10 = vadd.f32 %v1448_v9, %v1338_v8  ;;  %v118_v11 = vpop.f32.mrb[1].mxu1 }
  0xe1   :  { %v1838_v12 = vadd.f32 %v1338_v8, %v118_v11 }
  0xe3   :  { %327 = vrot.lane.b32.xlu1 %v1838_v12, %s1746_s18  ;;  %1453 = vmatprep.mubr.msk.f32.mxu1 %vm133_vm1, %v1838_v12  ;;  %v1845_v13 = vpack.i.bf16 %v1836_v10, %v1838_v12 }
  0xe5   :  { %1643 = vrot.lane.b32.xlu0 %v1845_v13, %s1747_s0 }
  0xe7   :  { %329 = vrot.lane.b32.xlu1 %v1836_v10, %s1746_s18 }
  0xe9   :  { %1648 = vrot.lane.b32.xlu0 %v1845_v13, %s1748_s3 }
 0x155   :  { %v328_v23 = vpop.permute.xlu1 %327 }
 0x157   :  { %v1644_v14 = vpop.permute.xlu0 %1643 }
 0x158   :  { %v1646_v15 = vunpack.i.h.bf16 %v1644_v14  ;;  %v1645_v16 = vunpack.i.l.bf16 %v1644_v14 }
 0x159   :  { %v330_v24 = vpop.permute.xlu1 %329 }
 0x15a   :  { %v1554_v18 = vpack.c.bf16 %v1646_v15, %v1645_v16 }
 0x15b   :  { %v1649_v19 = vpop.permute.xlu0 %1648 }
 0x15c   :  { %v1651_v20 = vunpack.i.h.bf16 %v1649_v19  ;;  %v1650_v21 = vunpack.i.l.bf16 %v1649_v19  ;;  %1556 = vmatprep.subr.msk.bf16.mxu1 %vm1852_vm2, %v1554_v18 }
 0x15d   :  { %1559 = vmatpush3.bf16.xpose.msk.msra.mxu1 %vm1852_vm2, %v1554_v18 }
 0x15e   :  { %v1564_v22 = vpack.c.bf16 %v1651_v20, %v1650_v21 }
 0x160   :  { %1566 = vmatprep.subr.msk.bf16.mxu1 %vm1852_vm2, %v1564_v22 }
 0x164   :  { %1454 = vmatmul.mubr.msk.f32.vlgmr.msra.gmra.mrb[2].mxu1 %vm133_vm1, %v1836_v10 }
 0x165   :  { %1569 = vmatpush3.bf16.xpose.msk.msra.mxu1 %vm1852_vm2, %v1564_v22  ;;  %1467 = vmatprep.mubr.msk.f32.mxu1 %vm133_vm1, %v328_v23 }
 0x16c   :  { %1468 = vmatmul.mubr.msk.f32.vlgmr.msra.gmra.mrb[4].mxu1 %vm133_vm1, %v330_v24 }
 0x237   :  { %v1455_v27 = vpop.f32.mrb[2].mxu1 }
 0x238   :  { %v214_v28 = vadd.f32 %v1455_v27, %v1871_v25  ;;  %v208_v29 = vpop.f32.mrb[3].mxu1 }
 0x239   :  { %v209_v30 = vadd.f32 %v208_v29, %v1876_v26 }
 0x23a   :  { %v221_v31 = vsel %vm217_vm3, %v214_v28, -inf }
 0x23b   :  { %222 = vmax.xlane.f32.xlu1 %v221_v31  ;;  %v218_v32 = vsel %vm217_vm3, %v209_v30, -inf }
 0x23c   :  { %219 = vmax.xlane.f32.xlu0 %v218_v32 }
 0x23f   :  { %v1469_v33 = vpop.f32.mrb[4].mxu1 }
 0x240   :  { %v409_v34 = vpop.f32.mrb[5].mxu1  ;;  %v415_v36 = vadd.f32 %v1469_v33, %v1871_v25 }
 0x241   :  { %v410_v35 = vadd.f32 %v409_v34, %v1876_v26 }
 0x242   :  { %v421_v38 = vsel %vm217_vm3, %v415_v36, -inf }
 0x243   :  { %v418_v37 = vsel %vm217_vm3, %v410_v35, -inf }
 0x244   :  { %419 = vmax.xlane.f32.xlu0 %v418_v37 }
 0x248   :  { %422 = vmax.xlane.f32.xlu0 %v421_v38 }
 0x24c   :  { %1653 = vrot.lane.b32.xlu1 %v1845_v13, %s1749_s1 }
 0x2c8   :  { %v223_v39 = vpop.xlane.xlu1 %222 }
 0x2c9   :  { %v225_v40 = vsub.f32 %v214_v28, %v223_v39  ;;  %v220_v41 = vpop.xlane.xlu0 %219 }
 0x2ca   :  { %v224_v42 = vsub.f32 %v209_v30, %v220_v41 }
 0x2cb   :  { %v228_v43 = vmul.f32 1.442695, %v225_v40 }
 0x2cc   :  { %v226_v44 = vmul.f32 1.442695, %v224_v42  ;;  %v1654_v45 = vpop.permute.xlu1 %1653 }
 0x2cd   :  { %1682 = vpow2.f32 %v228_v43  ;;  %v1656_v46 = vunpack.i.h.bf16 %v1654_v45  ;;  %v1655_v47 = vunpack.i.l.bf16 %v1654_v45 }
 0x2ce   :  { %1684 = vpow2.f32 %v226_v44 }
 0x2cf   :  { %v1560_v48 = vpack.c.bf16 %v1656_v46, %v1655_v47 }
 0x2d1   :  { %1561 = vmatprep.subr.bf16.mxu0 %v1560_v48  ;;  %v420_v49 = vpop.xlane.xlu0 %419 }
 0x2d2   :  { %1563 = vmatpush3.bf16.msra.mxu0 %v1560_v48  ;;  %v424_v59 = vsub.f32 %v410_v35, %v420_v49 }
 0x2d4   :  { %v426_v60 = vmul.f32 1.442695, %v424_v59 }
 0x2d5   :  { %v423_v50 = vpop.xlane.xlu0 %422 }
 0x2d6   :  { %v425_v51 = vsub.f32 %v415_v36, %v423_v50 }
 0x2d7   :  { %v1683_v52 = vpop.eup %1682 }
 0x2d8   :  { %v1685_v53 = vpop.eup %1684  ;;  %v428_v54 = vmul.f32 1.442695, %v425_v51  ;;  %v233_v55 = vsel %vm217_vm3, %v1683_v52, 0.0 }
 0x2d9   :  { %234 = vadd.xlane.f32.xlu0 %v233_v55  ;;  %v230_v56 = vsel %vm217_vm3, %v1685_v53, 0.0 }
 0x2da   :  { %1686 = vpow2.f32 %v428_v54  ;;  %231 = vadd.xlane.f32.xlu1 %v230_v56 }
 0x2db   :  { %1688 = vpow2.f32 %v426_v60 }
 0x2e4   :  { %v1687_v57 = vpop.eup %1686 }
 0x2e5   :  { %v433_v58 = vsel %vm217_vm3, %v1687_v57, 0.0  ;;  %v1689_v61 = vpop.eup %1688 }
 0x2e6   :  { %434 = vadd.xlane.f32.xlu0 %v433_v58  ;;  %v430_v62 = vsel %vm217_vm3, %v1689_v61, 0.0 }
 0x2eb   :  { %1663 = vrot.lane.b32.xlu1 %v1845_v13, %s1750_s23 }
 0x2fc   :  { %1658 = vrot.lane.b32.xlu0 %v1845_v13, %s1751_s24  ;;  %s1760_s24 = smov [#allocation2]  }
 0x300   :  { %529 = vrot.lane.b32.xlu0 %v1836_v10, %s1752_s25 }
 0x30f   :  { %431 = vadd.xlane.f32.xlu1 %v430_v62 }
 0x320   :  { %527 = vrot.lane.b32.xlu1 %v1838_v12, %s1752_s25  ;;  %s1327_s25 = sshll.u32 %s1760_s24, 4  ;;  %s1328_s25 = int_to_ptr.vmem [resolvable:$true] %s1327_s25 }
 0x321   :  { %p1727_p1 = scmp.lt.s32.totalorder %s1328_s25, %s1328_s25 }
 0x366   :  { %v235_v63 = vpop.xlane.xlu0 %234 }
 0x367   :  { %1690 = vrcp.f32 %v235_v63  ;;  %v232_v0 = vpop.xlane.xlu1 %231 }
 0x368   :  { %1692 = vrcp.f32 %v232_v0 }
 0x36b   :  { %v1664_v8 = vpop.permute.xlu1 %1663 }
 0x36c   :  { %v1666_v11 = vunpack.i.h.bf16 %v1664_v8  ;;  %v1665_v14 = vunpack.i.l.bf16 %v1664_v8 }
 0x36e   :  { %v1574_v19 = vpack.c.bf16 %v1666_v11, %v1665_v14 }
 0x371   :  { %v1691_v1 = vpop.eup %1690 }
 0x372   :  { %v1693_v2 = vpop.eup %1692  ;;  %v239_v6 = vmul.f32 %v1691_v1, %v1683_v52 }
 0x373   :  { %v435_v3 = vpop.xlane.xlu0 %434  ;;  %v237_v4 = vmul.f32 %v1693_v2, %v1685_v53 }
 0x374   :  { %1694 = vrcp.f32 %v435_v3 }
 0x375   :  { %1460 = vmatprep.mubr.msk.f32.mxu0 %vm217_vm3, %v237_v4 }
 0x376   :  { %1461 = vmatmul.mubr.msk.f32.vlgmr.msra.gmra.mrb[0].mxu0 %vm217_vm3, %v239_v6 }
 0x377   :  { %v1659_v9 = vpop.permute.xlu0 %1658 }
 0x378   :  { %v1661_v15 = vunpack.i.h.bf16 %v1659_v9  ;;  %v1660_v16 = vunpack.i.l.bf16 %v1659_v9 }
 0x37a   :  { %v1570_v18 = vpack.c.bf16 %v1661_v15, %v1660_v16 }
 0x37b   :  { %v530_v28 = vpop.permute.xlu0 %529 }
 0x37c   :  { %1571 = vmatprep.subr.bf16.mxu0 %v1570_v18 }
 0x37d   :  { %1573 = vmatpush3.bf16.msra.mxu0 %v1570_v18 }
 0x37e   :  { %1576 = vmatprep.subr.msk.bf16.mxu0 %vm1852_vm2, %v1574_v19  ;;  %v1695_v21 = vpop.eup %1694 }
 0x37f   :  { %v439_v24 = vmul.f32 %v1695_v21, %v1687_v57 }
 0x39c   :  { %v432_v20 = vpop.xlane.xlu1 %431 }
 0x39d   :  { %1696 = vrcp.f32 %v432_v20 }
 0x3a0   :  { %v528_v27 = vpop.permute.xlu1 %527 }
 0x3a7   :  { %v1697_v22 = vpop.eup %1696 }
 0x3a8   :  { %v437_v23 = vmul.f32 %v1697_v22, %v1689_v61 }
 0x3aa   :  { %1474 = vmatprep.mubr.msk.f32.mxu0 %vm217_vm3, %v437_v23 }
 0x3ab   :  { %1475 = vmatmul.mubr.msk.f32.vlgmr.msra.gmra.mrb[2].mxu0 %vm217_vm3, %v439_v24 }
 0x3ac   :  { %1579 = vmatpush3.bf16.xpose.msk.msra.mxu0 %vm1852_vm2, %v1574_v19  ;;  %1481 = vmatprep.mubr.msk.f32.mxu0 %vm133_vm1, %v528_v27 }
 0x3b3   :  { %1482 = vmatmul.mubr.msk.f32.vlgmr.msra.gmra.mrb[4].mxu0 %vm133_vm1, %v530_v28 }
 0x449   :  { %v1905_v29 = vpop.f32.mrb[0].mxu0 }
 0x44a   :  { %v1907_v30 = vpop.f32.mrb[1].mxu0 }
 0x47e   :  { %v1909_v31 = vpop.f32.mrb[2].mxu0 }
 0x47f   :  { %v1911_v32 = vpop.f32.mrb[3].mxu0 }
 0x486   :  { %v1483_v33 = vpop.f32.mrb[4].mxu0 }
 0x487   :  { %v615_v34 = vadd.f32 %v1483_v33, %v1871_v25  ;;  %v609_v35 = vpop.f32.mrb[5].mxu0 }
 0x488   :  { %v610_v36 = vadd.f32 %v609_v35, %v1876_v26  ;;  %v960_v35 = vld [vmem:[%s2052_s4 + $0x10] sm:$0xff] }
 0x489   :  { %v621_v37 = vsel %vm217_vm3, %v615_v34, -inf }
 0x48a   :  { %622 = vmax.xlane.f32.xlu0 %v621_v37  ;;  %v618_v38 = vsel %vm217_vm3, %v610_v36, -inf  ;;  %v961_v37 = vld [vmem:[%s2052_s4 + $0x18] sm:$0xff] }
 0x48b   :  { %619 = vmax.xlane.f32.xlu1 %v618_v38  ;;  %v1598_v38 = vpack.c.bf16 %v961_v37, %v960_v35 }
 0x517   :  { %v623_v39 = vpop.xlane.xlu0 %622 }
 0x518   :  { %v625_v40 = vsub.f32 %v615_v34, %v623_v39  ;;  %v620_v41 = vpop.xlane.xlu1 %619  ;;  %v959_v34 = vld [vmem:[%s2052_s4 + $0x8] sm:$0xff] }
 0x519   :  { %v624_v42 = vsub.f32 %v610_v36, %v620_v41 }
 0x51a   :  { %v628_v43 = vmul.f32 1.442695, %v625_v40 }
 0x51b   :  { %v626_v44 = vmul.f32 1.442695, %v624_v42 }
 0x51c   :  { %1698 = vpow2.f32 %v628_v43 }
 0x51d   :  { %1700 = vpow2.f32 %v626_v44 }
 0x526   :  { %v1699_v45 = vpop.eup %1698 }
 0x527   :  { %v1701_v46 = vpop.eup %1700  ;;  %v633_v47 = vsel %vm217_vm3, %v1699_v45, 0.0 }
 0x528   :  { %634 = vadd.xlane.f32.xlu1 %v633_v47  ;;  %v630_v48 = vsel %vm217_vm3, %v1701_v46, 0.0 }
 0x529   :  { %631 = vadd.xlane.f32.xlu0 %v630_v48 }
 0x539   :  { %1673 = vrot.lane.b32.xlu1 %v1845_v13, %s1753_s26  ;;  %s1722_s26 = scalar_lea.vmem %s1328_s25, 256 }
 0x53a   :  { %p1723_p0 = scmp.ne.s32.totalorder %s1328_s25, %s1722_s26  ;;  %p1728_p2 = scmp.lt.s32.totalorder %s1722_s26, %s1722_s26 }
 0x53c   :  { %p1729_p3 = por %p1728_p2, %p1727_p1 }
 0x53d   :  { %727 = vrot.lane.b32.xlu1 %v1838_v12, %s1754_s27 }
 0x53e   :  { %p1730_p4 = pnand %p1729_p3, %p1723_p0 }
 0x53f   :  { %1668 = vrot.lane.b32.xlu0 %v1845_v13, %s1755_s28 }
 0x543   :  { %729 = vrot.lane.b32.xlu0 %v1836_v10, %s1754_s27 }
 0x5b5   :  { %v635_v49 = vpop.xlane.xlu1 %634 }
 0x5b6   :  { %1702 = vrcp.f32 %v635_v49  ;;  %v632_v50 = vpop.xlane.xlu0 %631 }
 0x5b7   :  { %1704 = vrcp.f32 %v632_v50 }
 0x5b9   :  { %v1674_v51 = vpop.permute.xlu1 %1673 }
 0x5ba   :  { %v1669_v52 = vpop.permute.xlu0 %1668  ;;  %v1676_v53 = vunpack.i.h.bf16 %v1674_v51  ;;  %v1675_v54 = vunpack.i.l.bf16 %v1674_v51 }
 0x5bb   :  { %v1671_v55 = vunpack.i.h.bf16 %v1669_v52  ;;  %v1670_v56 = vunpack.i.l.bf16 %v1669_v52 }
 0x5bc   :  { %v1584_v58 = vpack.c.bf16 %v1676_v53, %v1675_v54  ;;  %v1365_v53 = vld [vmem:[%s2055_s7] ss:$0 sm:$0xff] }
 0x5bd   :  { %v1580_v57 = vpack.c.bf16 %v1671_v55, %v1670_v56  ;;  %v728_v61 = vpop.permute.xlu1 %727 }
 0x5be   :  { %v730_v62 = vpop.permute.xlu0 %729 }
 0x5bf   :  { %1581 = vmatprep.subr.bf16.mxu1 %v1580_v57 }
 0x5c0   :  { %v1703_v59 = vpop.eup %1702  ;;  %1583 = vmatpush3.bf16.msra.mxu1 %v1580_v57 }
 0x5c1   :  { %v1705_v12 = vpop.eup %1704  ;;  %1586 = vmatprep.subr.msk.bf16.mxu1 %vm1852_vm2, %v1584_v58  ;;  %v639_v60 = vmul.f32 %v1703_v59, %v1699_v45 }
 0x5c2   :  { %v637_v10 = vmul.f32 %v1705_v12, %v1701_v46 }
 0x5c4   :  { %1488 = vmatprep.mubr.msk.f32.mxu1 %vm217_vm3, %v637_v10 }
 0x5c5   :  { %1489 = vmatmul.mubr.msk.f32.vlgmr.msra.gmra.mrb[6].mxu1 %vm217_vm3, %v639_v60 }
 0x5c6   :  { %1495 = vmatprep.mubr.msk.f32.mxu1 %vm133_vm1, %v728_v61 }
 0x5c9   :  { %1589 = vmatpush3.bf16.xpose.msk.msra.mxu1 %vm1852_vm2, %v1584_v58 }
 0x5d0   :  { %1496 = vmatmul.mubr.msk.f32.vlgmr.msra.gmra.mrb[8].mxu1 %vm133_vm1, %v730_v62 }
 0x698   :  { %v1490_v63 = vpop.f32.mrb[6].mxu1 }
 0x699   :  { %v718_v0 = vpop.f32.mrb[7].mxu1 }
 0x6a3   :  { %v1497_v1 = vpop.f32.mrb[8].mxu1 }
 0x6a4   :  { %v815_v2 = vadd.f32 %v1497_v1, %v1871_v25  ;;  %v809_v3 = vpop.f32.mrb[9].mxu1 }
 0x6a5   :  { %v810_v4 = vadd.f32 %v809_v3, %v1876_v26  ;;  %v1092_v3 = vld [vmem:[%s2053_s5 + $0x8] sm:$0xff] }
 0x6a6   :  { %v821_v6 = vsel %vm217_vm3, %v815_v2, -inf }
 0x6a7   :  { %822 = vmax.xlane.f32.xlu0 %v821_v6  ;;  %v818_v8 = vsel %vm217_vm3, %v810_v4, -inf  ;;  %v1093_v6 = vld [vmem:[%s2053_s5 + $0x10] sm:$0xff] }
 0x6a8   :  { %819 = vmax.xlane.f32.xlu1 %v818_v8  ;;  %v1094_v8 = vld [vmem:[%s2053_s5 + $0x18] sm:$0xff] }
 0x734   :  { %v823_v9 = vpop.xlane.xlu0 %822 }
 0x735   :  { %v825_v17 = vsub.f32 %v815_v2, %v823_v9  ;;  %v820_v11 = vpop.xlane.xlu1 %819  ;;  %v1606_v9 = vpack.c.bf16 %v1094_v8, %v1093_v6  ;;  %v1376_v6 = vld [vmem:[%s2055_s7 + $0x5] ss:$0 sm:$0xff] }
 0x736   :  { %v824_v14 = vsub.f32 %v810_v4, %v820_v11  ;;  %v1184_v11 = vld [vmem:[%s2054_s6 + $0x8] sm:$0xff] }
 0x737   :  { %v828_v15 = vmul.f32 1.442695, %v825_v17  ;;  %v1183_v17 = vld [vmem:[%s2054_s6] sm:$0xff] }
 0x738   :  { %v826_v16 = vmul.f32 1.442695, %v824_v14  ;;  %v1185_v14 = vld [vmem:[%s2054_s6 + $0x10] sm:$0xff] }
 0x739   :  { %1706 = vpow2.f32 %v828_v15  ;;  %v1610_v15 = vpack.c.bf16 %v1184_v11, %v1183_v17  ;;  %v1377_v11 = vld [vmem:[%s2055_s7 + $0x6] ss:$0 sm:$0xff] }
 0x73a   :  { %1708 = vpow2.f32 %v826_v16  ;;  %v1186_v16 = vld [vmem:[%s2054_s6 + $0x18] sm:$0xff] }
 0x743   :  { %v1707_v18 = vpop.eup %1706 }
 0x744   :  { %v1709_v19 = vpop.eup %1708  ;;  %v833_v25 = vsel %vm217_vm3, %v1707_v18, 0.0 }
 0x745   :  { %834 = vadd.xlane.f32.xlu1 %v833_v25  ;;  %v830_v26 = vsel %vm217_vm3, %v1709_v19, 0.0  ;;  %v1188_v25 = vld [vmem:[%s2054_s6 + $0x28] sm:$0xff] }
 0x746   :  { %831 = vadd.xlane.f32.xlu0 %v830_v26 }
 0x756   :  { %929 = vrot.lane.b32.xlu1 %v1911_v32, %s1756_s29 }
 0x75a   :  { %931 = vrot.lane.b32.xlu1 %v1909_v31, %s1756_s29 }
 0x75c   :  { %1678 = vrot.lane.b32.xlu0 %v1845_v13, %s1757_s30  ;;  %v958_v13 = vld [vmem:[%s2052_s4] sm:$0xff] }
 0x75d   :  { %v1594_v36 = vpack.c.bf16 %v959_v34, %v958_v13 }
 0x75e   :  { %939 = vrot.lane.b32.xlu1 %v1490_v63, %s1758_s9 }
 0x760   :  { %937 = vrot.lane.b32.xlu0 %v718_v0, %s1758_s9 }
 0x7d2   :  { %v835_v20 = vpop.xlane.xlu1 %834 }
 0x7d3   :  { %1710 = vrcp.f32 %v835_v20  ;;  %v832_v21 = vpop.xlane.xlu0 %831 }
 0x7d4   :  { %1712 = vrcp.f32 %v832_v21 }
 0x7d6   :  { %v930_v41 = vpop.permute.xlu1 %929 }
 0x7d7   :  { %v1679_v22 = vpop.permute.xlu0 %1678  ;;  %v951_v45 = vsel %vm133_vm1, %v1907_v30, %v930_v41 }
 0x7d8   :  { %v1681_v23 = vunpack.i.h.bf16 %v1679_v22  ;;  %v1680_v24 = vunpack.i.l.bf16 %v1679_v22 }
 0x7da   :  { %v1590_v27 = vpack.c.bf16 %v1681_v23, %v1680_v24  ;;  %v932_v42 = vpop.permute.xlu1 %931 }
 0x7db   :  { %v938_v44 = vpop.permute.xlu0 %937  ;;  %v952_v47 = vsel %vm133_vm1, %v1905_v29, %v932_v42  ;;  %v1370_v42 = vld [vmem:[%s2055_s7 + $0x3] ss:$0 sm:$0xff] }
 0x7dc   :  { %1591 = vmatprep.subr.bf16.mxu0 %v1590_v27  ;;  %v953_v48 = vsel %vm217_vm3, %v951_v45, %v938_v44 }
 0x7dd   :  { %v1711_v28 = vpop.eup %1710  ;;  %1593 = vmatpush3.bf16.msra.mxu0 %v1590_v27 }
 0x7de   :  { %v1713_v32 = vpop.eup %1712  ;;  %v839_v31 = vmul.f32 %v1711_v28, %v1707_v18  ;;  %1595 = vmatprep.subr.bf16.mxu0 %v1594_v36  ;;  %v940_v43 = vpop.permute.xlu1 %939  ;;  %v1614_v18 = vpack.c.bf16 %v1186_v16, %v1185_v14 }
 0x7df   :  { %v837_v33 = vmul.f32 %v1713_v32, %v1709_v19  ;;  %v954_v50 = vsel %vm217_vm3, %v952_v47, %v940_v43  ;;  %v1187_v19 = vld [vmem:[%s2054_s6 + $0x20] sm:$0xff] }
 0x7e0   :  { %v1618_v26 = vpack.c.bf16 %v1188_v25, %v1187_v19  ;;  %v1368_v32 = vld [vmem:[%s2055_s7 + $0x1] ss:$0 sm:$0xff] }
 0x7e1   :  { %1502 = vmatprep.mubr.msk.f32.mxu0 %vm217_vm3, %v837_v33 }
 0x7e2   :  { %1503 = vmatmul.mubr.msk.f32.vlgmr.msra.gmra.mrb[6].mxu0 %vm217_vm3, %v839_v31  ;;  %v1369_v31 = vld [vmem:[%s2055_s7 + $0x2] ss:$0 sm:$0xff] }
 0x7e3   :  { %1597 = vmatpush3.bf16.msra.mxu0 %v1594_v36 }
 0x7e4   :  { %1599 = vmatprep.subr.bf16.mxu0 %v1598_v38 }
 0x7e7   :  { %1601 = vmatpush3.bf16.msra.mxu0 %v1598_v38 }
 0x7e8   :  { %1611 = vmatprep.subr.bf16.mxu0 %v1610_v15 }
 0x8b5   :  { %v1504_v39 = vpop.f32.mrb[6].mxu0 }
 0x8b6   :  { %947 = vrot.lane.b32.xlu1 %v1504_v39, %s1759_s17  ;;  %v918_v40 = vpop.f32.mrb[7].mxu0  ;;  %v1189_v39 = vld [vmem:[%s2054_s6 + $0x30] sm:$0xff] }
 0x8b7   :  { %945 = vrot.lane.b32.xlu0 %v918_v40, %s1759_s17  ;;  %v1190_v40 = vld [vmem:[%s2054_s6 + $0x38] sm:$0xff] }
 0x8b8   :  { %v1622_v41 = vpack.c.bf16 %v1190_v40, %v1189_v39 }
 0x928   :  { %v948_v46 = vpop.permute.xlu1 %947 }
 0x929   :  { %v946_v49 = vpop.permute.xlu0 %945  ;;  %v957_v52 = vsel %vm955_vm4, %v954_v50, %v948_v46 }
 0x92a   :  { %v956_v51 = vsel %vm955_vm4, %v953_v48, %v946_v49  ;;  %v1373_v49 = vld [vmem:[%s2055_s7 + $0x4] ss:$0 sm:$0xff] }
 0x92b   :  { %1513 = vmatprep.mubr.msk.f32.mxu0 %vm45_vm0, %v956_v51 }
 0x92c   :  { %1514 = vmatmul.mubr.msk.f32.vlgmr.msra.gmra.mrb[8].mxu0 %vm45_vm0, %v957_v52 }
 0x92d   :  { %1613 = vmatpush3.bf16.msra.mxu0 %v1610_v15 }
 0x92e   :  { %1615 = vmatprep.subr.bf16.mxu0 %v1614_v18 }
 0x931   :  { %1617 = vmatpush3.bf16.msra.mxu0 %v1614_v18 }
 0x932   :  { %1619 = vmatprep.subr.bf16.mxu0 %v1618_v26 }
 0x935   :  { %1621 = vmatpush3.bf16.msra.mxu0 %v1618_v26 }
 0x936   :  { %1623 = vmatprep.subr.bf16.mxu0 %v1622_v41 }
 0x939   :  { %1625 = vmatpush3.bf16.msra.mxu0 %v1622_v41 }
 0x9ff   :  { %v1515_v30 = vpop.f32.mrb[8].mxu0 }
 0xa00   :  { %v1045_v54 = vadd.f32 %v1515_v30, %v1365_v53  ;;  %v1039_v55 = vpop.f32.mrb[9].mxu0 }
 0xa01   :  { %v1040_v56 = vadd.f32 %v1365_v53, %v1039_v55 }
 0xa02   :  { %v1049_v29 = vadd.f32 %v1045_v54, %v1829_v7 }
 0xa03   :  { %v1048_v57 = vadd.f32 %v1040_v56, %v1822_v5  ;;  %v1091_v5 = vld [vmem:[%s2053_s5] sm:$0xff] }
 0xa04   :  { %v1055_v58 = vsel %vm45_vm0, %v1049_v29, 0.0  ;;  %v1602_v4 = vpack.c.bf16 %v1092_v3, %v1091_v5 }
 0xa05   :  { %1056 = vadd.xlane.f32.xlu1 %v1055_v58  ;;  %v1052_v59 = vsel %vm45_vm0, %v1048_v57, 0.0 }
 0xa06   :  { %1053 = vadd.xlane.f32.xlu0 %v1052_v59  ;;  %1603 = vmatprep.subr.bf16.mxu1 %v1602_v4 }
 0xa07   :  { %1605 = vmatpush3.bf16.msra.mxu1 %v1602_v4 }
 0xa08   :  { %1607 = vmatprep.subr.bf16.mxu1 %v1606_v9 }
 0xa0b   :  { %1609 = vmatpush3.bf16.msra.mxu1 %v1606_v9 }
 0xa92   :  { %v1057_v12 = vpop.xlane.xlu1 %1056 }
 0xa93   :  { %v1060_v10 = vmul.f32 0.03125, %v1057_v12  ;;  %v1054_v60 = vpop.xlane.xlu0 %1053 }
 0xa94   :  { %v1059_v61 = vmul.f32 0.03125, %v1054_v60 }
 0xa95   :  { %v1062_v62 = vsub.f32 %v1049_v29, %v1060_v10 }
 0xa96   :  { %v1061_v63 = vsub.f32 %v1048_v57, %v1059_v61 }
 0xa97   :  { %v1064_v2 = vmul.f32 %v1062_v62, %v1062_v62 }
 0xa98   :  { %v1063_v0 = vmul.f32 %v1061_v63, %v1061_v63 }
 0xa99   :  { %v1068_v7 = vsel %vm45_vm0, %v1064_v2, 0.0 }
 0xa9a   :  { %v1065_v1 = vsel %vm45_vm0, %v1063_v0, 0.0 }
 0xa9b   :  { %1066 = vadd.xlane.f32.xlu0 %v1065_v1 }
 0xa9f   :  { %1069 = vadd.xlane.f32.xlu0 %v1068_v7 }
 0xb28   :  { %v1067_v20 = vpop.xlane.xlu0 %1066 }
 0xb29   :  { %v1071_v21 = vmul.f32 0.03125, %v1067_v20 }
 0xb2b   :  { %v1073_v22 = vadd.f32 1e-12, %v1071_v21 }
 0xb2c   :  { %v1070_v23 = vpop.xlane.xlu0 %1069 }
 0xb2d   :  { %1714 = vrsqrt.f32 %v1073_v22  ;;  %v1072_v24 = vmul.f32 0.03125, %v1070_v23 }
 0xb2f   :  { %v1074_v27 = vadd.f32 1e-12, %v1072_v24 }
 0xb31   :  { %1716 = vrsqrt.f32 %v1074_v27 }
 0xb37   :  { %v1715_v28 = vpop.eup %1714 }
 0xb38   :  { %v1077_v33 = vmul.f32 %v1715_v28, %v1061_v63 }
 0xb3a   :  { %v1083_v13 = vmul.f32 %v1368_v32, %v1077_v33 }
 0xb3b   :  { %v1717_v34 = vpop.eup %1716 }
 0xb3c   :  { %v1078_v35 = vmul.f32 %v1717_v34, %v1062_v62  ;;  %v1089_v36 = vadd.f32 %v1369_v31, %v1083_v13 }
 0xb3e   :  { %v1084_v37 = vmul.f32 %v1368_v32, %v1078_v35  ;;  %1524 = vmatprep.mubr.msk.f32.mxu1 %vm45_vm0, %v1089_v36 }
 0xb40   :  { %v1090_v38 = vadd.f32 %v1369_v31, %v1084_v37 }
 0xb42   :  { %1525 = vmatmul.mubr.msk.f32.vlgmr.msra.gmra.mrb[10].mxu1 %vm45_vm0, %v1090_v38 }
 0xc15   :  { %v1526_v43 = vpop.f32.mrb[10].mxu1 }
 0xc16   :  { %v1178_v44 = vadd.f32 %v1526_v43, %v1370_v42  ;;  %v1172_v45 = vpop.f32.mrb[11].mxu1 }
 0xc17   :  { %v1173_v46 = vadd.f32 %v1370_v42, %v1172_v45 }
 0xc18   :  { %v1182_v48 = vmax.f32 %v1178_v44, 0.0 }
 0xc19   :  { %v1181_v47 = vmax.f32 %v1173_v46, 0.0 }
 0xc1b   :  { %1543 = vmatprep.mubr.msk.f32.mxu0 %vm1196_vm5, %v1181_v47 }
 0xc1c   :  { %1544 = vmatmul.mubr.msk.f32.vlgmr.msra.gmra.mrb[10].mxu0 %vm1196_vm5, %v1182_v48 }
 0xcef   :  { %v1545_v50 = vpop.f32.mrb[10].mxu0 }
 0xcf0   :  { %v1275_v51 = vadd.f32 %v1545_v50, %v1373_v49  ;;  %v1269_v52 = vpop.f32.mrb[11].mxu0 }
 0xcf1   :  { %v1270_v53 = vadd.f32 %v1373_v49, %v1269_v52 }
 0xcf2   :  { %v1279_v30 = vadd.f32 %v1275_v51, %v1090_v38 }
 0xcf3   :  { %v1278_v54 = vadd.f32 %v1270_v53, %v1089_v36 }
 0xcf4   :  { %v1285_v55 = vsel %vm45_vm0, %v1279_v30, 0.0 }
 0xcf5   :  { %1286 = vadd.xlane.f32.xlu0 %v1285_v55  ;;  %v1282_v56 = vsel %vm45_vm0, %v1278_v54, 0.0 }
 0xcf6   :  { %1283 = vadd.xlane.f32.xlu1 %v1282_v56 }
 0xd82   :  { %v1287_v29 = vpop.xlane.xlu0 %1286 }
 0xd83   :  { %v1289_v57 = vmul.f32 0.03125, %v1287_v29  ;;  %v1284_v58 = vpop.xlane.xlu1 %1283 }
 0xd84   :  { %v1288_v59 = vmul.f32 0.03125, %v1284_v58 }
 0xd85   :  { %v1291_v12 = vsub.f32 %v1279_v30, %v1289_v57 }
 0xd86   :  { %v1290_v10 = vsub.f32 %v1278_v54, %v1288_v59 }
 0xd87   :  { %v1293_v60 = vmul.f32 %v1291_v12, %v1291_v12 }
 0xd88   :  { %v1292_v61 = vmul.f32 %v1290_v10, %v1290_v10 }
 0xd89   :  { %v1297_v62 = vsel %vm45_vm0, %v1293_v60, 0.0 }
 0xd8a   :  { %1298 = vadd.xlane.f32.xlu0 %v1297_v62  ;;  %v1294_v63 = vsel %vm45_vm0, %v1292_v61, 0.0 }
 0xd8b   :  { %1295 = vadd.xlane.f32.xlu1 %v1294_v63 }
 0xe17   :  { %v1299_v0 = vpop.xlane.xlu0 %1298 }
 0xe18   :  { %v1301_v1 = vmul.f32 0.03125, %v1299_v0  ;;  %v1296_v2 = vpop.xlane.xlu1 %1295 }
 0xe19   :  { %v1300_v7 = vmul.f32 0.03125, %v1296_v2 }
 0xe1a   :  { %v1303_v5 = vadd.f32 1e-12, %v1301_v1 }
 0xe1b   :  { %v1302_v3 = vadd.f32 1e-12, %v1300_v7 }
 0xe1c   :  { %1718 = vrsqrt.f32 %v1303_v5 }
 0xe1d   :  { %1720 = vrsqrt.f32 %v1302_v3 }
 0xe26   :  { %v1719_v4 = vpop.eup %1718 }
 0xe27   :  { %v1721_v8 = vpop.eup %1720  ;;  %v1307_v9 = vmul.f32 %v1719_v4, %v1291_v12 }
 0xe28   :  { %v1306_v17 = vmul.f32 %v1721_v8, %v1290_v10 }
 0xe29   :  { %v1313_v14 = vmul.f32 %v1376_v6, %v1307_v9 }
 0xe2a   :  { %v1312_v15 = vmul.f32 %v1376_v6, %v1306_v17 }
 0xe2b   :  { %v1319_v16 = vadd.f32 %v1377_v11, %v1313_v14 }
 0xe2c   :  { %v1318_v18 = vadd.f32 %v1377_v11, %v1312_v15 }
 0xe2d   :  { %1321 = vst.msk [vmem:[#allocation2 + $0x8] sm:$0xff] %vm45_vm0, %v1319_v16 }
 0xe2e   :  { %1320 = vst.msk [vmem:[#allocation2] sm:$0xff] %vm45_vm0, %v1318_v18 }
 0xe2f   :  { %1733 = shalt.err (!%p1730_p4)
}
 0xe30   :  { %s1734_s28 = scalar_lea.hbm %s2056_s8, 256 }
 0xe31   :  { %p1735_p5 = scmp.ne.s32.totalorder %s2056_s8, %s1734_s28  ;;  %p1738_p6 = scmp.lt.u32.totalorder %s1734_s28, %s2056_s8 }
 0xe33   :  { %p1740_p7 = pnand %p1738_p6, %p1735_p5 }
 0xe35   :  { %1743 = shalt.err (!%p1740_p7)
}
 0xe36   :  { %s1761_s11 = smov 128  }
 0xe37   :  { %1333 = dma.vmem_to_hbm [thread:$0]  %s1328_s25, 256, %s2056_s8, [#allocation3], %s1761_s11, %s1761_s11, %s1756_s29  }
 0xe38   :  { %1744 = dma.done.wait [#allocation3], 256  }
 0xe39   :  { %1745 = vsyncadd [#allocation3], 4294967040 }
 0xe3a   :  { %1337 = vsyncpa [#allocation3], 1 }

</bundles_post_ra>
